<compile_context>
chip_gen: v7x
topology: tpu7x:2x2x1
jax: 0.10.0
libtpu: 0.0.40
codegen_flags: <defaults>
</compile_context>

<pallas_src>
import functools
import math

import jax
import jax.numpy as jnp
from jax import lax
from jax.experimental import pallas as pl
from jax.experimental.pallas import tpu as pltpu


def _leaky_relu(x, alpha=0.2):
    return jnp.where(x >= 0, x, alpha * x)


def _default_act_dtype():
    """bf16 LeakyReLU epilogue on chips with a bf16 VPU (v6e/v7x), f32 otherwise."""
    try:
        kind = jax.devices()[0].device_kind.lower()
    except Exception:
        return jnp.bfloat16
    if any(tag in kind for tag in ("v2", "v3", "v4", "v5 lite", "v5lite", "v5e")):
        return jnp.float32
    return jnp.bfloat16


def disc_mlp_kernel(x_ref, w1_ref, b1_ref, w2_ref, b2_ref, w3_ref, b3_ref, o_ref,
                    *, act_dtype):
    # x_ref : [Bt, D]   f32  (cast to bf16 in-kernel, right before the MXU)
    # w1_ref: [D, H1]   bf16   w2_ref: [H1, H2] bf16   w3_ref: [1, H2] bf16
    # b1/b2 : [1, H]    f32    b3_ref: [1, 1]   f32
    # o_ref : [1, 1, Bt] f32  (lane-dense logit row for this batch tile)
    x = x_ref[...].astype(jnp.bfloat16)

    h1 = jnp.dot(x, w1_ref[...], preferred_element_type=jnp.float32)      # MXU, f32 acc
    # Dropout = identity (eval mode).
    h1 = _leaky_relu((h1 + b1_ref[...]).astype(act_dtype))                # VPU epilogue

    h2 = jnp.dot(h1.astype(jnp.bfloat16), w2_ref[...],
                 preferred_element_type=jnp.float32)                      # MXU, f32 acc
    h2 = _leaky_relu((h2 + b2_ref[...]).astype(act_dtype))                # VPU epilogue

    # Final 256 -> 1 layer: contract the last dims of [1,H2] x [Bt,H2]
    # (q@k.T-style matmul) so the result is directly a lane-dense [1, Bt] row.
    logits = lax.dot_general(
        w3_ref[...], h2.astype(jnp.bfloat16),
        dimension_numbers=(((1,), (1,)), ((), ())),
        preferred_element_type=jnp.float32)                               # [1, Bt] f32
    logits = logits + b3_ref[...]
    o_ref[...] = logits.reshape(o_ref.shape).astype(o_ref.dtype)


def discriminator_mlp_forward(x_nchw, params, b_tile=1024):
    """x_nchw: [B, C, H, W] float32. Returns logits [B, 1] float32 (eval-mode dropout)."""
    B = x_nchw.shape[0]
    x_flat = x_nchw.reshape(B, -1).astype(jnp.float32)       # nn.Flatten on NCHW

    w1, b1, w2, b2, w3, b3 = params
    D, H1 = w1.shape
    H2 = w2.shape[1]
    assert x_flat.shape[1] == D

    # --- batch tiling --------------------------------------------------------
    # Small batches run as a single tile; large batches stream b_tile rows per
    # grid step (>= 2 steps lets the 'parallel' axis shard over v7x's 2 TCs).
    B_pad = ((B + 7) // 8) * 8                                # sublane alignment
    if B_pad <= b_tile:
        b_tile_eff = B_pad
    else:
        b_tile_eff = b_tile
        B_pad = ((B + b_tile - 1) // b_tile) * b_tile
    if B_pad != B:
        x_flat = jnp.pad(x_flat, ((0, B_pad - B), (0, 0)))
    num_tiles = B_pad // b_tile_eff

    # --- operand dtype prep: bf16 weights for the MXU, f32 biases for the VPU
    w1_bf = w1.astype(jnp.bfloat16)
    w2_bf = w2.astype(jnp.bfloat16)
    w3_bf = w3.reshape(1, H2).astype(jnp.bfloat16)            # [H2,1] -> [1,H2] row
    b1_f = b1.reshape(1, H1).astype(jnp.float32)
    b2_f = b2.reshape(1, H2).astype(jnp.float32)
    b3_f = b3.reshape(1, 1).astype(jnp.float32)

    act_dtype = _default_act_dtype()
    kernel = functools.partial(disc_mlp_kernel, act_dtype=act_dtype)

    out = pl.pallas_call(
        kernel,
        out_shape=jax.ShapeDtypeStruct((num_tiles, 1, b_tile_eff), jnp.float32),
        grid=(num_tiles,),
        in_specs=[
            # x: streamed per batch tile, f32, unpadded feature dim (D == full dim).
            pl.BlockSpec((b_tile_eff, D), lambda i: (i, 0)),
            pl.BlockSpec((D, H1), lambda i: (0, 0)),          # w1: resident
            pl.BlockSpec((1, H1), lambda i: (0, 0)),          # b1: resident
            pl.BlockSpec((H1, H2), lambda i: (0, 0)),         # w2: resident
            pl.BlockSpec((1, H2), lambda i: (0, 0)),          # b2: resident
            pl.BlockSpec((1, H2), lambda i: (0, 0)),          # w3 row: resident
            pl.BlockSpec((1, 1), lambda i: (0, 0)),           # b3: resident
        ],
        # Lane-dense output row per tile: unmasked vst + one dense writeback DMA.
        out_specs=pl.BlockSpec((1, 1, b_tile_eff), lambda i: (i, 0, 0)),
        compiler_params=pltpu.CompilerParams(
            dimension_semantics=("parallel",),
            vmem_limit_bytes=48 << 20,
        ),
    )(x_flat, w1_bf, b1_f, w2_bf, b2_f, w3_bf, b3_f)

    # [num_tiles, 1, b_tile] -> [B_pad, 1] -> drop padded rows.
    return out.reshape(B_pad, 1)[:B]


def init_params(key, input_dims=784, hidden_dims=(512, 256)):
    """Deterministic init mimicking nn.Linear defaults (uniform +/- 1/sqrt(fan_in))."""
    dims = [input_dims] + list(hidden_dims) + [1]
    params = []
    for i in range(len(dims) - 1):
        fan_in, fan_out = dims[i], dims[i + 1]
        key, kw, kb = jax.random.split(key, 3)
        bound = 1.0 / math.sqrt(fan_in)
        w = jax.random.uniform(kw, (fan_in, fan_out), jnp.float32, -bound, bound)
        b = jax.random.uniform(kb, (1, fan_out), jnp.float32, -bound, bound)
        params.extend([w, b])
    return tuple(params)


if __name__ == "__main__":
    key = jax.random.PRNGKey(0)
    key, kx = jax.random.split(key)

    # MNIST-like small input: [B=2, C=1, H=28, W=28] -> flattened dim 784
    x = jax.random.normal(kx, (2, 1, 28, 28), dtype=jnp.float32)
    params = init_params(key, input_dims=784, hidden_dims=(512, 256))

    preds = discriminator_mlp_forward(x, params)
    preds = jax.block_until_ready(preds)
    assert preds.shape == (2, 1) and preds.dtype == jnp.float32

    w1, b1, w2, b2, w3, b3 = params
    xf = x.reshape(2, -1)
    act_dtype = _default_act_dtype()

    # Reference 1: same bf16-operand / f32-accumulate / act_dtype-epilogue recipe
    # in plain JAX (tight check).
    h = jnp.dot(xf.astype(jnp.bfloat16), w1.astype(jnp.bfloat16),
                preferred_element_type=jnp.float32) + b1
    h = h.astype(act_dtype)
    h = jnp.where(h >= 0, h, 0.2 * h)
    h = jnp.dot(h.astype(jnp.bfloat16), w2.astype(jnp.bfloat16),
                preferred_element_type=jnp.float32) + b2
    h = h.astype(act_dtype)
    h = jnp.where(h >= 0, h, 0.2 * h)
    ref_bf16 = lax.dot_general(
        w3.reshape(1, -1).astype(jnp.bfloat16), h.astype(jnp.bfloat16),
        dimension_numbers=(((1,), (1,)), ((), ())),
        preferred_element_type=jnp.float32).reshape(-1, 1) + b3
    assert jnp.allclose(preds, ref_bf16, atol=1e-2, rtol=1e-2)

    # Reference 2: full f32 reference (loose check, bounds bf16 cast error).
    h = xf @ w1 + b1
    h = jnp.where(h >= 0, h, 0.2 * h)
    h = h @ w2 + b2
    h = jnp.where(h >= 0, h, 0.2 * h)
    ref_f32 = h @ w3 + b3
    assert jnp.allclose(preds, ref_f32, atol=5e-2, rtol=5e-2)

    print("KERNEL_OK")
</pallas_src>

<mosaic_0001>
module attributes {stable_mosaic.version = 11 : i64} {
  func.func @disc_mlp_kernel(%arg0: i32, %arg1: memref<8x784xf32, #tpu.memory_space<vmem>>, %arg2: memref<784x512xbf16, #tpu.memory_space<vmem>>, %arg3: memref<1x512xf32, #tpu.memory_space<vmem>>, %arg4: memref<512x256xbf16, #tpu.memory_space<vmem>>, %arg5: memref<1x256xf32, #tpu.memory_space<vmem>>, %arg6: memref<1x256xbf16, #tpu.memory_space<vmem>>, %arg7: memref<1x1xf32, #tpu.memory_space<vmem>>, %arg8: memref<1x1x8xf32, #tpu.memory_space<vmem>>) attributes {dimension_semantics = [#tpu.dimension_semantics<parallel>], iteration_bounds = array<i64: 1>, scalar_prefetch = 0 : i64, scratch_operands = 0 : i64, tpu.core_type = #tpu.core_type<tc>, window_params = [{transform_indices = @transform_0, window_bounds = array<i64: 8, 784>}, {pipeline_mode = #tpu.pipeline_mode<synchronous>, transform_indices = @transform_1, window_bounds = array<i64: 784, 512>}, {pipeline_mode = #tpu.pipeline_mode<synchronous>, transform_indices = @transform_2, window_bounds = array<i64: 1, 512>}, {pipeline_mode = #tpu.pipeline_mode<synchronous>, transform_indices = @transform_3, window_bounds = array<i64: 512, 256>}, {pipeline_mode = #tpu.pipeline_mode<synchronous>, transform_indices = @transform_4, window_bounds = array<i64: 1, 256>}, {pipeline_mode = #tpu.pipeline_mode<synchronous>, transform_indices = @transform_5, window_bounds = array<i64: 1, 256>}, {pipeline_mode = #tpu.pipeline_mode<synchronous>, transform_indices = @transform_6, window_bounds = array<i64: 1, 1>}, {transform_indices = @transform_7, window_bounds = array<i64: 1, 1, 8>}]} {
    %c0 = arith.constant 0 : index
    %c0_0 = arith.constant 0 : index
    %0 = vector.load %arg1[%c0, %c0_0] : memref<8x784xf32, #tpu.memory_space<vmem>>, vector<8x784xf32>
    %1 = arith.truncf %0 : vector<8x784xf32> to vector<8x784xbf16>
    %c0_1 = arith.constant 0 : index
    %c0_2 = arith.constant 0 : index
    %2 = vector.load %arg2[%c0_1, %c0_2] : memref<784x512xbf16, #tpu.memory_space<vmem>>, vector<784x512xbf16>
    %cst = arith.constant dense<0.000000e+00> : vector<8x512xf32>
    %3 = tpu.matmul %1, %2, %cst {dimension_numbers = #tpu.dot_dimension_numbers<[1], [0], [0], [1], [0, 0, 1, 1], [], []>} : vector<8x784xbf16>, vector<784x512xbf16>, vector<8x512xf32> -> vector<8x512xf32>
    %c0_3 = arith.constant 0 : index
    %c0_4 = arith.constant 0 : index
    %4 = vector.load %arg3[%c0_3, %c0_4] : memref<1x512xf32, #tpu.memory_space<vmem>>, vector<1x512xf32>
    %5 = vector.broadcast %4 : vector<1x512xf32> to vector<8x512xf32>
    %6 = arith.addf %3, %5 : vector<8x512xf32>
    %7 = arith.truncf %6 : vector<8x512xf32> to vector<8x512xbf16>
    %cst_5 = arith.constant 0.000000e+00 : bf16
    %8 = vector.broadcast %cst_5 : bf16 to vector<8x512xbf16>
    %9 = arith.cmpf oge, %7, %8 : vector<8x512xbf16>
    %cst_6 = arith.constant 2.001950e-01 : bf16
    %10 = vector.broadcast %cst_6 : bf16 to vector<8x512xbf16>
    %11 = arith.mulf %10, %7 : vector<8x512xbf16>
    %12 = arith.select %9, %7, %11 : vector<8x512xi1>, vector<8x512xbf16>
    %c0_7 = arith.constant 0 : index
    %c0_8 = arith.constant 0 : index
    %13 = vector.load %arg4[%c0_7, %c0_8] : memref<512x256xbf16, #tpu.memory_space<vmem>>, vector<512x256xbf16>
    %cst_9 = arith.constant dense<0.000000e+00> : vector<8x256xf32>
    %14 = tpu.matmul %12, %13, %cst_9 {dimension_numbers = #tpu.dot_dimension_numbers<[1], [0], [0], [1], [0, 0, 1, 1], [], []>} : vector<8x512xbf16>, vector<512x256xbf16>, vector<8x256xf32> -> vector<8x256xf32>
    %c0_10 = arith.constant 0 : index
    %c0_11 = arith.constant 0 : index
    %15 = vector.load %arg5[%c0_10, %c0_11] : memref<1x256xf32, #tpu.memory_space<vmem>>, vector<1x256xf32>
    %16 = vector.broadcast %15 : vector<1x256xf32> to vector<8x256xf32>
    %17 = arith.addf %14, %16 : vector<8x256xf32>
    %18 = arith.truncf %17 : vector<8x256xf32> to vector<8x256xbf16>
    %cst_12 = arith.constant 0.000000e+00 : bf16
    %19 = vector.broadcast %cst_12 : bf16 to vector<8x256xbf16>
    %20 = arith.cmpf oge, %18, %19 : vector<8x256xbf16>
    %cst_13 = arith.constant 2.001950e-01 : bf16
    %21 = vector.broadcast %cst_13 : bf16 to vector<8x256xbf16>
    %22 = arith.mulf %21, %18 : vector<8x256xbf16>
    %23 = arith.select %20, %18, %22 : vector<8x256xi1>, vector<8x256xbf16>
    %c0_14 = arith.constant 0 : index
    %c0_15 = arith.constant 0 : index
    %24 = vector.load %arg6[%c0_14, %c0_15] : memref<1x256xbf16, #tpu.memory_space<vmem>>, vector<1x256xbf16>
    %cst_16 = arith.constant dense<0.000000e+00> : vector<1x8xf32>
    %25 = tpu.matmul %24, %23, %cst_16 {dimension_numbers = #tpu.dot_dimension_numbers<[1], [1], [0], [0], [0, 0, 1, 0], [], []>} : vector<1x256xbf16>, vector<8x256xbf16>, vector<1x8xf32> -> vector<1x8xf32>
    %c0_17 = arith.constant 0 : index
    %c0_18 = arith.constant 0 : index
    %26 = vector.load %arg7[%c0_17, %c0_18] : memref<1x1xf32, #tpu.memory_space<vmem>>, vector<1x1xf32>
    %27 = vector.broadcast %26 : vector<1x1xf32> to vector<1x8xf32>
    %28 = arith.addf %25, %27 : vector<1x8xf32>
    %29 = vector.shape_cast %28 : vector<1x8xf32> to vector<1x1x8xf32>
    %c0_19 = arith.constant 0 : index
    %c0_20 = arith.constant 0 : index
    %c0_21 = arith.constant 0 : index
    %30 = vector.load %arg8[%c0_19, %c0_20, %c0_21] : memref<1x1x8xf32, #tpu.memory_space<vmem>>, vector<1x1x8xf32>
    tpu.vector_store %arg8[%c0_19, %c0_20, %c0_21], %29 {strides = array<i32>} : memref<1x1x8xf32, #tpu.memory_space<vmem>>, vector<1x1x8xf32>,
    return
  }
  func.func @transform_0(%arg0: i32) -> (i32, i32) {
    %c0_i32 = arith.constant 0 : i32
    %c0_i32_0 = arith.constant 0 : i32
    return %arg0, %c0_i32 : i32, i32
  }
  func.func @transform_1(%arg0: i32) -> (i32, i32) {
    %c0_i32 = arith.constant 0 : i32
    %c0_i32_0 = arith.constant 0 : i32
    %c0_i32_1 = arith.constant 0 : i32
    return %c0_i32, %c0_i32_0 : i32, i32
  }
  func.func @transform_2(%arg0: i32) -> (i32, i32) {
    %c0_i32 = arith.constant 0 : i32
    %c0_i32_0 = arith.constant 0 : i32
    %c0_i32_1 = arith.constant 0 : i32
    return %c0_i32, %c0_i32_0 : i32, i32
  }
  func.func @transform_3(%arg0: i32) -> (i32, i32) {
    %c0_i32 = arith.constant 0 : i32
    %c0_i32_0 = arith.constant 0 : i32
    %c0_i32_1 = arith.constant 0 : i32
    return %c0_i32, %c0_i32_0 : i32, i32
  }
  func.func @transform_4(%arg0: i32) -> (i32, i32) {
    %c0_i32 = arith.constant 0 : i32
    %c0_i32_0 = arith.constant 0 : i32
    %c0_i32_1 = arith.constant 0 : i32
    return %c0_i32, %c0_i32_0 : i32, i32
  }
  func.func @transform_5(%arg0: i32) -> (i32, i32) {
    %c0_i32 = arith.constant 0 : i32
    %c0_i32_0 = arith.constant 0 : i32
    %c0_i32_1 = arith.constant 0 : i32
    return %c0_i32, %c0_i32_0 : i32, i32
  }
  func.func @transform_6(%arg0: i32) -> (i32, i32) {
    %c0_i32 = arith.constant 0 : i32
    %c0_i32_0 = arith.constant 0 : i32
    %c0_i32_1 = arith.constant 0 : i32
    return %c0_i32, %c0_i32_0 : i32, i32
  }
  func.func @transform_7(%arg0: i32) -> (i32, i32, i32) {
    %c0_i32 = arith.constant 0 : i32
    %c0_i32_0 = arith.constant 0 : i32
    %c0_i32_1 = arith.constant 0 : i32
    return %arg0, %c0_i32, %c0_i32_0 : i32, i32, i32
  }
}

</mosaic_0001>

<bundles_post_ra>
// kernel: tpu_custom_call.1
= control target key start
LH: loop header
LB: loop body
LE: loop exit
PB: predicated region body
PF: predicated region fallthrough
CT: control target
= control target key end

     0   :  { %s3165_s0 = inlined_call_operand.hbm [shape: f32[8,784], index: 0, kind: input, shape index: {}]   ;;  %s3166_s1 = inlined_call_operand.hbm [shape: bf16[784,512], index: 1, kind: input, shape index: {}]   ;;  %s3167_s2 = inlined_call_operand.vmem [shape: f32[1,512], index: 2, kind: input, shape index: {}]   ;;  %s3168_s3 = inlined_call_operand.hbm [shape: bf16[512,256], index: 3, kind: input, shape index: {}]   ;;  %s3169_s4 = inlined_call_operand.vmem [shape: f32[1,256], index: 4, kind: input, shape index: {}]   ;;  %s3170_s5 = inlined_call_operand.vmem [shape: bf16[1,256], index: 5, kind: input, shape index: {}]   ;;  %s3171_s6 = inlined_call_operand.<no memory space> [shape: f32[1,1], index: 6, kind: input, shape index: {}]   ;;  %s3172_s7 = inlined_call_operand.hbm [shape: f32[1,1,8], index: 7, kind: output, shape index: {}]  }
   0x1   :  { %v12_v0 = vstv %s3171_s6 }
   0x2   :  { %13 = vst [vmem:[#allocation2] sm:$0x1] %v12_v0 }
   0x3   :  { %14 = vsyncpa [#allocation4], 0 }
   0x4   :  { %15 = vsyncpa [#allocation7], 0 }
   0x5   :  { %16 = vsyncpa [#allocation5], 0  ;;  %s3000_s26 = smov [#allocation6]   ;;  %s2906_s30 = scalar_lea.hbm %s3166_s1, 25088 }
   0x6   :  { %s32_s27 = sshll.u32 %s3000_s26, 4  ;;  %p2907_p0 = scmp.ne.s32.totalorder %s3166_s1, %s2906_s30  ;;  %s33_s27 = int_to_ptr.vmem [resolvable:$true] %s32_s27 }
   0x7   :  { %p2910_p1 = scmp.lt.u32.totalorder %s2906_s30, %s3166_s1 }
   0x9   :  { %p2912_p2 = pnand %p2910_p1, %p2907_p0 }
   0xb   :  { %2915 = shalt.err (!%p2912_p2)
}
   0xc   :  { %s2916_s6 = scalar_lea.vmem %s33_s27, 25088  ;;  %p2921_p4 = scmp.lt.s32.totalorder %s33_s27, %s33_s27 }
   0xd   :  { %p2917_p3 = scmp.ne.s32.totalorder %s33_s27, %s2916_s6  ;;  %p2922_p5 = scmp.lt.s32.totalorder %s2916_s6, %s2916_s6 }
   0xf   :  { %p2923_p6 = por %p2922_p5, %p2921_p4 }
  0x11   :  { %p2924_p7 = pnand %p2923_p6, %p2917_p3 }
  0x13   :  { %2927 = shalt.err (!%p2924_p7)
}
  0x14   :  { %s3001_s12 = smov 256   ;;  %s3002_s13 = smov 16  }
  0x15   :  { %38 = dma.hbm_to_vmem [thread:$0]  %s3166_s1, 25088, %s33_s27, [#allocation7], %s3001_s12, %s3001_s12, %s3002_s13  }
  0x16   :  { %s3003_s16 = smov [#allocation3]   ;;  %s3004_s18 = smov [#allocation8]  }
  0x17   :  { %s23_s17 = sshll.u32 %s3003_s16, 4  ;;  %s46_s19 = sshll.u32 %s3004_s18, 4  ;;  %s24_s17 = int_to_ptr.vmem [resolvable:$true] %s23_s17  ;;  %s47_s19 = int_to_ptr.vmem [resolvable:$true] %s46_s19 }
  0x18   :  { %s2928_s22 = scalar_lea.hbm %s3165_s0, 896 }
  0x19   :  { %p2929_p8 = scmp.ne.s32.totalorder %s3165_s0, %s2928_s22  ;;  %p2932_p9 = scmp.lt.u32.totalorder %s2928_s22, %s3165_s0 }
  0x1b   :  { %p2934_p10 = pnand %p2932_p9, %p2929_p8 }
  0x1d   :  { %2937 = shalt.err (!%p2934_p10)
}
  0x1e   :  { %s2938_s1 = scalar_lea.vmem %s24_s17, 896  ;;  %p2943_p12 = scmp.lt.s32.totalorder %s24_s17, %s24_s17 }
  0x1f   :  { %p2939_p11 = scmp.ne.s32.totalorder %s24_s17, %s2938_s1  ;;  %p2944_p13 = scmp.lt.s32.totalorder %s2938_s1, %s2938_s1 }
  0x21   :  { %p2945_p0 = por %p2944_p13, %p2943_p12 }
  0x23   :  { %p2946_p1 = pnand %p2945_p0, %p2939_p11 }
  0x25   :  { %2949 = shalt.err (!%p2946_p1)
}
  0x26   :  { %26 = dma.hbm_to_vmem [thread:$0]  %s3165_s0, 896, %s24_s17, [#allocation4]  }
  0x27   :  { %s2950_s8 = scalar_lea.hbm %s3168_s3, 8192 }
  0x28   :  { %p2951_p2 = scmp.ne.s32.totalorder %s3168_s3, %s2950_s8  ;;  %p2954_p3 = scmp.lt.u32.totalorder %s2950_s8, %s3168_s3 }
  0x2a   :  { %p2956_p4 = pnand %p2954_p3, %p2951_p2 }
  0x2c   :  { %2959 = shalt.err (!%p2956_p4)
}
  0x2d   :  { %s2960_s12 = scalar_lea.vmem %s47_s19, 8192  ;;  %p2965_p6 = scmp.lt.s32.totalorder %s47_s19, %s47_s19 }
  0x2e   :  { %p2961_p5 = scmp.ne.s32.totalorder %s47_s19, %s2960_s12  ;;  %p2966_p7 = scmp.lt.s32.totalorder %s2960_s12, %s2960_s12 }
  0x30   :  { %p2967_p8 = por %p2966_p7, %p2965_p6 }
  0x32   :  { %p2968_p9 = pnand %p2967_p8, %p2961_p5 }
  0x34   :  { %2971 = shalt.err (!%p2968_p9)
}
  0x35   :  { %s3005_s0 = smov 128   ;;  %s3006_s13 = smov 8  }
  0x36   :  { %52 = dma.hbm_to_vmem [thread:$0]  %s3168_s3, 8192, %s47_s19, [#allocation7], %s3005_s0, %s3005_s0, %s3006_s13  }
  0x37   :  { %2994 = dma.done.wait [#allocation4], 896  }
  0x38   :  { %2995 = vsyncadd [#allocation4], 4294966400 }
  0x39   :  { %2996 = dma.done.wait [#allocation7], 33280  }
  0x3a   :  { %2997 = vsyncadd [#allocation7], 4294934016  ;;  %v2516_v1 = vld [vmem:[#allocation6 + $0x4] ss:$16 sps:$4 sm:$0xff]   ;;  %v2520_v3 = vld [vmem:[#allocation6] ss:$16 sps:$4 sm:$0xff]  }
  0x3b   :  { %v2518_v2 = vld [vmem:[#allocation6 + $0x204] ss:$16 sps:$4 sm:$0xff]   ;;  %1286 = vmatprep.subr.bf16.mxu1 %v2516_v1  ;;  %v2521_v4 = vld [vmem:[#allocation6 + $0x200] ss:$16 sps:$4 sm:$0xff]   ;;  %v3007_v19 = vmov 0   ;;  %vm1282_vm0 = vcmask 130048  }
  0x3c   :  { %1327 = vmatprep.subr.bf16.mxu0 %v2518_v2  ;;  %v2522_v5 = vld [vmem:[#allocation6 + $0x24] ss:$16 sps:$4 sm:$0xff]   ;;  %1287 = vmatpush1.bf16.msra.mxu1 %v2520_v3  ;;  %v2526_v7 = vld [vmem:[#allocation6 + $0x20] ss:$16 sps:$4 sm:$0xff]   ;;  %vm2192_vm7 = vcmask 57344  }
  0x3d   :  { %1328 = vmatpush1.bf16.msra.mxu0 %v2521_v4  ;;  %v2524_v6 = vld [vmem:[#allocation6 + $0x224] ss:$16 sps:$4 sm:$0xff]   ;;  %1288 = vmatprep.subr.bf16.mxu1 %v2522_v5  ;;  %v2527_v8 = vld [vmem:[#allocation6 + $0x220] ss:$16 sps:$4 sm:$0xff]  }
  0x3e   :  { %1329 = vmatprep.subr.bf16.mxu0 %v2524_v6  ;;  %v2528_v9 = vld [vmem:[#allocation6 + $0x44] ss:$16 sps:$4 sm:$0xff]   ;;  %v2532_v11 = vld [vmem:[#allocation6 + $0x40] ss:$16 sps:$4 sm:$0xff]   ;;  %2515 = vset.pattern.permute.xlu0 %v3007_v19  ;;  %v70_v6 = vld [vmem:[#allocation3] sm:$0xff] }
  0x3f   :  { %v2530_v10 = vld [vmem:[#allocation6 + $0x244] ss:$16 sps:$4 sm:$0xff]   ;;  %v2533_v12 = vld [vmem:[#allocation6 + $0x240] ss:$16 sps:$4 sm:$0xff]  }
  0x40   :  { %1289 = vmatpush1.bf16.msra.mxu1 %v2526_v7  ;;  %v2534_v13 = vld [vmem:[#allocation6 + $0x64] ss:$16 sps:$4 sm:$0xff]   ;;  %v2538_v15 = vld [vmem:[#allocation6 + $0x60] ss:$16 sps:$4 sm:$0xff]  }
  0x41   :  { %1330 = vmatpush1.bf16.msra.mxu0 %v2527_v8  ;;  %1290 = vmatprep.subr.bf16.mxu1 %v2528_v9  ;;  %v2536_v14 = vld [vmem:[#allocation6 + $0x264] ss:$16 sps:$4 sm:$0xff]   ;;  %v2539_v16 = vld [vmem:[#allocation6 + $0x260] ss:$16 sps:$4 sm:$0xff]   ;;  %v72_v8 = vld [vmem:[#allocation3 + $0x10] sm:$0xff] }
  0x42   :  { %1331 = vmatprep.subr.bf16.mxu0 %v2530_v10  ;;  %v2540_v17 = vld [vmem:[#allocation6 + $0x84] ss:$16 sps:$4 sm:$0xff]   ;;  %v2544_v20 = vld [vmem:[#allocation6 + $0x80] ss:$16 sps:$4 sm:$0xff]   ;;  %v2617_v9 = vld [vmem:[#allocation6 + $0xc] ss:$16 sps:$4 sm:$0xff]   ;;  %v3096_v10 = vpack.c.bf16 %v70_v6, %v70_v6 }
  0x43   :  { %v2542_v18 = vld [vmem:[#allocation6 + $0x284] ss:$16 sps:$4 sm:$0xff]   ;;  %v2545_v21 = vld [vmem:[#allocation6 + $0x280] ss:$16 sps:$4 sm:$0xff]  }
  0x44   :  { %1291 = vmatpush1.bf16.msra.mxu1 %v2532_v11  ;;  %v2546_v22 = vld [vmem:[#allocation6 + $0xa4] ss:$16 sps:$4 sm:$0xff]   ;;  %v2550_v24 = vld [vmem:[#allocation6 + $0xa0] ss:$16 sps:$4 sm:$0xff]  }
  0x45   :  { %1332 = vmatpush1.bf16.msra.mxu0 %v2533_v12  ;;  %1292 = vmatprep.subr.bf16.mxu1 %v2534_v13  ;;  %v2548_v23 = vld [vmem:[#allocation6 + $0x2a4] ss:$16 sps:$4 sm:$0xff]   ;;  %v2551_v25 = vld [vmem:[#allocation6 + $0x2a0] ss:$16 sps:$4 sm:$0xff]   ;;  %v2615_v12 = vld [vmem:[#allocation6 + $0x8] ss:$16 sps:$4 sm:$0xff]   ;;  %v3098_v13 = vpack.c.bf16 %v72_v8, %v72_v8 }
  0x46   :  { %1333 = vmatprep.subr.bf16.mxu0 %v2536_v14  ;;  %v2552_v26 = vld [vmem:[#allocation6 + $0xc4] ss:$16 sps:$4 sm:$0xff]   ;;  %v2556_v28 = vld [vmem:[#allocation6 + $0xc0] ss:$16 sps:$4 sm:$0xff]  }
  0x47   :  { %v2554_v27 = vld [vmem:[#allocation6 + $0x2c4] ss:$16 sps:$4 sm:$0xff]   ;;  %v2557_v29 = vld [vmem:[#allocation6 + $0x2c0] ss:$16 sps:$4 sm:$0xff]  }
  0x48   :  { %1293 = vmatpush1.bf16.msra.mxu1 %v2538_v15  ;;  %v2558_v30 = vld [vmem:[#allocation6 + $0xe4] ss:$16 sps:$4 sm:$0xff]   ;;  %v2562_v32 = vld [vmem:[#allocation6 + $0xe0] ss:$16 sps:$4 sm:$0xff]   ;;  %v2623_v15 = vld [vmem:[#allocation6 + $0x2c] ss:$16 sps:$4 sm:$0xff]  }
  0x49   :  { %1334 = vmatpush1.bf16.msra.mxu0 %v2539_v16  ;;  %1294 = vmatprep.subr.bf16.mxu1 %v2540_v17  ;;  %v2560_v31 = vld [vmem:[#allocation6 + $0x2e4] ss:$16 sps:$4 sm:$0xff]   ;;  %v2563_v33 = vld [vmem:[#allocation6 + $0x2e0] ss:$16 sps:$4 sm:$0xff]   ;;  %v2621_v17 = vld [vmem:[#allocation6 + $0x28] ss:$16 sps:$4 sm:$0xff]  }
  0x4a   :  { %1335 = vmatprep.subr.bf16.mxu0 %v2542_v18  ;;  %v2564_v34 = vld [vmem:[#allocation6 + $0x104] ss:$16 sps:$4 sm:$0xff]   ;;  %v2568_v36 = vld [vmem:[#allocation6 + $0x100] ss:$16 sps:$4 sm:$0xff]  }
  0x4b   :  { %v2566_v35 = vld [vmem:[#allocation6 + $0x304] ss:$16 sps:$4 sm:$0xff]   ;;  %v2569_v37 = vld [vmem:[#allocation6 + $0x300] ss:$16 sps:$4 sm:$0xff]  }
  0x4c   :  { %1295 = vmatpush1.bf16.msra.mxu1 %v2544_v20  ;;  %v2570_v38 = vld [vmem:[#allocation6 + $0x124] ss:$16 sps:$4 sm:$0xff]   ;;  %v2574_v40 = vld [vmem:[#allocation6 + $0x120] ss:$16 sps:$4 sm:$0xff]   ;;  %v2629_v20 = vld [vmem:[#allocation6 + $0x4c] ss:$16 sps:$4 sm:$0xff]  }
  0x4d   :  { %1336 = vmatpush1.bf16.msra.mxu0 %v2545_v21  ;;  %1296 = vmatprep.subr.bf16.mxu1 %v2546_v22  ;;  %v2572_v39 = vld [vmem:[#allocation6 + $0x324] ss:$16 sps:$4 sm:$0xff]   ;;  %v2575_v41 = vld [vmem:[#allocation6 + $0x320] ss:$16 sps:$4 sm:$0xff]   ;;  %v2627_v22 = vld [vmem:[#allocation6 + $0x48] ss:$16 sps:$4 sm:$0xff]  }
  0x4e   :  { %1337 = vmatprep.subr.bf16.mxu0 %v2548_v23  ;;  %v2576_v42 = vld [vmem:[#allocation6 + $0x144] ss:$16 sps:$4 sm:$0xff]   ;;  %v2580_v44 = vld [vmem:[#allocation6 + $0x140] ss:$16 sps:$4 sm:$0xff]  }
  0x4f   :  { %v2578_v43 = vld [vmem:[#allocation6 + $0x344] ss:$16 sps:$4 sm:$0xff]   ;;  %v2581_v45 = vld [vmem:[#allocation6 + $0x340] ss:$16 sps:$4 sm:$0xff]  }
  0x50   :  { %1297 = vmatpush1.bf16.msra.mxu1 %v2550_v24  ;;  %v2582_v46 = vld [vmem:[#allocation6 + $0x164] ss:$16 sps:$4 sm:$0xff]   ;;  %v2586_v49 = vld [vmem:[#allocation6 + $0x160] ss:$16 sps:$4 sm:$0xff]   ;;  %v2635_v24 = vld [vmem:[#allocation6 + $0x6c] ss:$16 sps:$4 sm:$0xff]  }
  0x51   :  { %1338 = vmatpush1.bf16.msra.mxu0 %v2551_v25  ;;  %1298 = vmatprep.subr.bf16.mxu1 %v2552_v26  ;;  %v2584_v47 = vld [vmem:[#allocation6 + $0x364] ss:$16 sps:$4 sm:$0xff]   ;;  %v2587_v52 = vld [vmem:[#allocation6 + $0x360] ss:$16 sps:$4 sm:$0xff]   ;;  %v2633_v26 = vld [vmem:[#allocation6 + $0x68] ss:$16 sps:$4 sm:$0xff]  }
  0x52   :  { %1339 = vmatprep.subr.bf16.mxu0 %v2554_v27  ;;  %v71_v48 = vld [vmem:[#allocation3 + $0x8] sm:$0xff]  ;;  %v73_v51 = vld [vmem:[#allocation3 + $0x18] sm:$0xff] }
  0x53   :  { %v3090_v50 = vpack.c.bf16 %v71_v48, %v71_v48  ;;  %v2588_v53 = vld [vmem:[#allocation6 + $0x184] ss:$16 sps:$4 sm:$0xff]   ;;  %v3092_v54 = vpack.c.bf16 %v73_v51, %v73_v51  ;;  %v2592_v56 = vld [vmem:[#allocation6 + $0x180] ss:$16 sps:$4 sm:$0xff]   ;;  %v2663_v48 = vld [vmem:[#allocation6 + $0x108] ss:$16 sps:$4 sm:$0xff]  }
  0x54   :  { %1299 = vmatpush1.bf16.msra.mxu1 %v2556_v28  ;;  %v2590_v55 = vld [vmem:[#allocation6 + $0x384] ss:$16 sps:$4 sm:$0xff]   ;;  %v2593_v57 = vld [vmem:[#allocation6 + $0x380] ss:$16 sps:$4 sm:$0xff]   ;;  %v2641_v28 = vld [vmem:[#allocation6 + $0x8c] ss:$16 sps:$4 sm:$0xff]  }
  0x55   :  { %1340 = vmatpush1.bf16.msra.mxu0 %v2557_v29  ;;  %1300 = vmatprep.subr.bf16.mxu1 %v2558_v30  ;;  %v2594_v58 = vld [vmem:[#allocation6 + $0x1a4] ss:$16 sps:$4 sm:$0xff]   ;;  %v2598_v60 = vld [vmem:[#allocation6 + $0x1a0] ss:$16 sps:$4 sm:$0xff]   ;;  %v2639_v30 = vld [vmem:[#allocation6 + $0x88] ss:$16 sps:$4 sm:$0xff]  }
  0x56   :  { %1341 = vmatprep.subr.bf16.mxu0 %v2560_v31  ;;  %1318 = vmatprep.mubr.bf16.mxu1 %v3090_v50  ;;  %v2596_v59 = vld [vmem:[#allocation6 + $0x3a4] ss:$16 sps:$4 sm:$0xff]   ;;  %v2599_v61 = vld [vmem:[#allocation6 + $0x3a0] ss:$16 sps:$4 sm:$0xff]  }
  0x57   :  { %1359 = vmatprep.mubr.bf16.mxu0 %v3092_v54  ;;  %v2600_v62 = vld [vmem:[#allocation6 + $0x1c4] ss:$16 sps:$4 sm:$0xff]   ;;  %v2604_v0 = vld [vmem:[#allocation6 + $0x1c0] ss:$16 sps:$4 sm:$0xff]  }
  0x58   :  { %1301 = vmatpush1.bf16.msra.mxu1 %v2562_v32  ;;  %v2602_v63 = vld [vmem:[#allocation6 + $0x3c4] ss:$16 sps:$4 sm:$0xff]   ;;  %v2605_v1 = vld [vmem:[#allocation6 + $0x3c0] ss:$16 sps:$4 sm:$0xff]   ;;  %v2647_v32 = vld [vmem:[#allocation6 + $0xac] ss:$16 sps:$4 sm:$0xff]  }
  0x59   :  { %1342 = vmatpush1.bf16.msra.mxu0 %v2563_v33  ;;  %1302 = vmatprep.subr.bf16.mxu1 %v2564_v34  ;;  %v2606_v2 = vld [vmem:[#allocation6 + $0x1e4] ss:$16 sps:$4 sm:$0xff]   ;;  %v2610_v4 = vld [vmem:[#allocation6 + $0x1e0] ss:$16 sps:$4 sm:$0xff]   ;;  %v2645_v34 = vld [vmem:[#allocation6 + $0xa8] ss:$16 sps:$4 sm:$0xff]  }
  0x5a   :  { %1343 = vmatprep.subr.bf16.mxu0 %v2566_v35  ;;  %v2608_v3 = vld [vmem:[#allocation6 + $0x3e4] ss:$16 sps:$4 sm:$0xff]   ;;  %v2611_v5 = vld [vmem:[#allocation6 + $0x3e0] ss:$16 sps:$4 sm:$0xff]  }
  0x5b   :  { %v2614_v7 = vld [vmem:[#allocation6 + $0x404] ss:$16 sps:$4 sm:$0xff]   ;;  %v2612_v11 = vld [vmem:[#allocation6 + $0x400] ss:$16 sps:$4 sm:$0xff]  }
  0x5c   :  { %1303 = vmatpush1.bf16.msra.mxu1 %v2568_v36  ;;  %v2620_v14 = vld [vmem:[#allocation6 + $0x424] ss:$16 sps:$4 sm:$0xff]   ;;  %v2618_v16 = vld [vmem:[#allocation6 + $0x420] ss:$16 sps:$4 sm:$0xff]   ;;  %v2653_v36 = vld [vmem:[#allocation6 + $0xcc] ss:$16 sps:$4 sm:$0xff]  }
  0x5d   :  { %1344 = vmatpush1.bf16.msra.mxu0 %v2569_v37  ;;  %1304 = vmatprep.subr.bf16.mxu1 %v2570_v38  ;;  %v2626_v18 = vld [vmem:[#allocation6 + $0x444] ss:$16 sps:$4 sm:$0xff]   ;;  %v2624_v21 = vld [vmem:[#allocation6 + $0x440] ss:$16 sps:$4 sm:$0xff]  }
  0x5e   :  { %1345 = vmatprep.subr.bf16.mxu0 %v2572_v39  ;;  %v2632_v23 = vld [vmem:[#allocation6 + $0x464] ss:$16 sps:$4 sm:$0xff]   ;;  %v2630_v25 = vld [vmem:[#allocation6 + $0x460] ss:$16 sps:$4 sm:$0xff]  }
  0x5f   :  { %v2638_v27 = vld [vmem:[#allocation6 + $0x484] ss:$16 sps:$4 sm:$0xff]   ;;  %v2636_v29 = vld [vmem:[#allocation6 + $0x480] ss:$16 sps:$4 sm:$0xff]  }
  0x60   :  { %1305 = vmatpush1.bf16.msra.mxu1 %v2574_v40  ;;  %v2644_v31 = vld [vmem:[#allocation6 + $0x4a4] ss:$16 sps:$4 sm:$0xff]   ;;  %v2642_v33 = vld [vmem:[#allocation6 + $0x4a0] ss:$16 sps:$4 sm:$0xff]   ;;  %v2651_v40 = vld [vmem:[#allocation6 + $0xc8] ss:$16 sps:$4 sm:$0xff]  }
  0x61   :  { %1346 = vmatpush1.bf16.msra.mxu0 %v2575_v41  ;;  %1306 = vmatprep.subr.bf16.mxu1 %v2576_v42  ;;  %v2650_v35 = vld [vmem:[#allocation6 + $0x4c4] ss:$16 sps:$4 sm:$0xff]   ;;  %v2648_v39 = vld [vmem:[#allocation6 + $0x4c0] ss:$16 sps:$4 sm:$0xff]   ;;  %v2659_v42 = vld [vmem:[#allocation6 + $0xec] ss:$16 sps:$4 sm:$0xff]  }
  0x62   :  { %1347 = vmatprep.subr.bf16.mxu0 %v2578_v43  ;;  %v75_v37 = vld [vmem:[#allocation3 + $0x28] sm:$0xff] }
  0x63   :  { %v3103_v38 = vpack.c.bf16 %v75_v37, %v75_v37  ;;  %v2656_v41 = vld [vmem:[#allocation6 + $0x4e4] ss:$16 sps:$4 sm:$0xff]   ;;  %v2654_v43 = vld [vmem:[#allocation6 + $0x4e0] ss:$16 sps:$4 sm:$0xff]  }
  0x64   :  { %1307 = vmatpush1.bf16.msra.mxu1 %v2580_v44  ;;  %v2657_v44 = vld [vmem:[#allocation6 + $0xe8] ss:$16 sps:$4 sm:$0xff]   ;;  %v2666_v51 = vld [vmem:[#allocation6 + $0x520] ss:$16 sps:$4 sm:$0xff]   ;;  %v2698_v6 = vld [vmem:[#allocation6 + $0x5c4] ss:$16 sps:$4 sm:$0xff]  }
  0x65   :  { %1348 = vmatpush1.bf16.msra.mxu0 %v2581_v45  ;;  %1308 = vmatprep.subr.bf16.mxu1 %v2582_v46  ;;  %v2662_v45 = vld [vmem:[#allocation6 + $0x504] ss:$16 sps:$4 sm:$0xff]   ;;  %v2665_v46 = vld [vmem:[#allocation6 + $0x10c] ss:$16 sps:$4 sm:$0xff]   ;;  %v2696_v8 = vld [vmem:[#allocation6 + $0x5c0] ss:$16 sps:$4 sm:$0xff]  }
  0x66   :  { %1349 = vmatprep.subr.bf16.mxu0 %v2584_v47  ;;  %v2660_v47 = vld [vmem:[#allocation6 + $0x500] ss:$16 sps:$4 sm:$0xff]   ;;  %v2812_v37 = vld [vmem:[#allocation8 + $0x4] ss:$8 sps:$4 sm:$0xff]  }
  0x68   :  { %1309 = vmatpush1.bf16.msra.mxu1 %v2586_v49  ;;  %v2668_v49 = vld [vmem:[#allocation6 + $0x524] ss:$16 sps:$4 sm:$0xff]  }
  0x69   :  { %1350 = vmatpush1.bf16.msra.mxu0 %v2587_v52  ;;  %1310 = vmatprep.subr.bf16.mxu1 %v2588_v53  ;;  %v2669_v52 = vld [vmem:[#allocation6 + $0x128] ss:$16 sps:$4 sm:$0xff]   ;;  %v2674_v53 = vld [vmem:[#allocation6 + $0x544] ss:$16 sps:$4 sm:$0xff]  }
  0x6a   :  { %1351 = vmatprep.subr.bf16.mxu0 %v2590_v55  ;;  %v2677_v55 = vld [vmem:[#allocation6 + $0x14c] ss:$16 sps:$4 sm:$0xff]  }
  0x6c   :  { %1311 = vmatpush1.bf16.msra.mxu1 %v2592_v56  ;;  %v2672_v56 = vld [vmem:[#allocation6 + $0x540] ss:$16 sps:$4 sm:$0xff]  }
  0x6d   :  { %1352 = vmatpush1.bf16.msra.mxu0 %v2593_v57  ;;  %1312 = vmatprep.subr.bf16.mxu1 %v2594_v58  ;;  %v2675_v57 = vld [vmem:[#allocation6 + $0x148] ss:$16 sps:$4 sm:$0xff]   ;;  %v2680_v58 = vld [vmem:[#allocation6 + $0x564] ss:$16 sps:$4 sm:$0xff]  }
  0x6e   :  { %1353 = vmatprep.subr.bf16.mxu0 %v2596_v59  ;;  %v2683_v59 = vld [vmem:[#allocation6 + $0x16c] ss:$16 sps:$4 sm:$0xff]  }
  0x70   :  { %1313 = vmatpush1.bf16.msra.mxu1 %v2598_v60  ;;  %v2678_v60 = vld [vmem:[#allocation6 + $0x560] ss:$16 sps:$4 sm:$0xff]  }
  0x71   :  { %1354 = vmatpush1.bf16.msra.mxu0 %v2599_v61  ;;  %1314 = vmatprep.subr.bf16.mxu1 %v2600_v62  ;;  %v2681_v61 = vld [vmem:[#allocation6 + $0x168] ss:$16 sps:$4 sm:$0xff]   ;;  %v2686_v62 = vld [vmem:[#allocation6 + $0x584] ss:$16 sps:$4 sm:$0xff]  }
  0x72   :  { %1355 = vmatprep.subr.bf16.mxu0 %v2602_v63  ;;  %v2689_v63 = vld [vmem:[#allocation6 + $0x18c] ss:$16 sps:$4 sm:$0xff]  }
  0x74   :  { %1315 = vmatpush1.bf16.msra.mxu1 %v2604_v0  ;;  %v2684_v0 = vld [vmem:[#allocation6 + $0x580] ss:$16 sps:$4 sm:$0xff]  }
  0x75   :  { %1356 = vmatpush1.bf16.msra.mxu0 %v2605_v1  ;;  %1316 = vmatprep.subr.bf16.mxu1 %v2606_v2  ;;  %v2687_v1 = vld [vmem:[#allocation6 + $0x188] ss:$16 sps:$4 sm:$0xff]   ;;  %v2692_v2 = vld [vmem:[#allocation6 + $0x5a4] ss:$16 sps:$4 sm:$0xff]  }
  0x76   :  { %1357 = vmatprep.subr.bf16.mxu0 %v2608_v3  ;;  %v2695_v3 = vld [vmem:[#allocation6 + $0x1ac] ss:$16 sps:$4 sm:$0xff]  }
  0x78   :  { %1317 = vmatpush1.bf16.msra.mxu1 %v2610_v4  ;;  %v2690_v4 = vld [vmem:[#allocation6 + $0x5a0] ss:$16 sps:$4 sm:$0xff]  }
  0x79   :  { %1358 = vmatpush1.bf16.msra.mxu0 %v2611_v5  ;;  %1450 = vmatprep.subr.bf16.mxu1 %v2617_v9  ;;  %v2693_v5 = vld [vmem:[#allocation6 + $0x1a8] ss:$16 sps:$4 sm:$0xff]  }
  0x7a   :  { %1368 = vmatprep.subr.bf16.mxu0 %v2614_v7  ;;  %v2701_v7 = vld [vmem:[#allocation6 + $0x1cc] ss:$16 sps:$4 sm:$0xff]   ;;  %v2699_v9 = vld [vmem:[#allocation6 + $0x1c8] ss:$16 sps:$4 sm:$0xff]  }
  0x7b   :  { %1319 = vmatmul.mubr.bf16.vlgmr.msra.gmra.mrb[0].mxu1 %v3096_v10 }
  0x7c   :  { %1360 = vmatmul.mubr.bf16.vlgmr.msra.gmra.mrb[0].mxu0 %v3098_v13  ;;  %1451 = vmatpush1.bf16.msra.mxu1 %v2615_v12  ;;  %v2707_v12 = vld [vmem:[#allocation6 + $0x1ec] ss:$16 sps:$4 sm:$0xff]  }
  0x7d   :  { %1369 = vmatpush1.bf16.msra.mxu0 %v2612_v11  ;;  %1452 = vmatprep.subr.bf16.mxu1 %v2623_v15  ;;  %v2704_v11 = vld [vmem:[#allocation6 + $0x5e4] ss:$16 sps:$4 sm:$0xff]   ;;  %v2705_v15 = vld [vmem:[#allocation6 + $0x1e8] ss:$16 sps:$4 sm:$0xff]  }
  0x7e   :  { %1370 = vmatprep.subr.bf16.mxu0 %v2620_v14  ;;  %1482 = vmatprep.mubr.bf16.mxu1 %v3090_v50  ;;  %v2671_v50 = vld [vmem:[#allocation6 + $0x12c] ss:$16 sps:$4 sm:$0xff]   ;;  %v2702_v14 = vld [vmem:[#allocation6 + $0x5e0] ss:$16 sps:$4 sm:$0xff]  }
  0x7f   :  { %1400 = vmatprep.mubr.bf16.mxu0 %v3103_v38 }
  0x80   :  { %1453 = vmatpush1.bf16.msra.mxu1 %v2621_v17  ;;  %v2710_v17 = vld [vmem:[#allocation6 + $0x20c] ss:$16 sps:$4 sm:$0xff]  }
  0x81   :  { %1371 = vmatpush1.bf16.msra.mxu0 %v2618_v16  ;;  %1454 = vmatprep.subr.bf16.mxu1 %v2629_v20  ;;  %v74_v16 = vld [vmem:[#allocation3 + $0x20] sm:$0xff] }
  0x82   :  { %1372 = vmatprep.subr.bf16.mxu0 %v2626_v18  ;;  %v2716_v18 = vld [vmem:[#allocation6 + $0x604] ss:$16 sps:$4 sm:$0xff]   ;;  %v3106_v20 = vpack.c.bf16 %v74_v16, %v74_v16  ;;  %v2764_v16 = vld [vmem:[#allocation6 + $0x42c] ss:$16 sps:$4 sm:$0xff]  }
  0x84   :  { %1455 = vmatpush1.bf16.msra.mxu1 %v2627_v22  ;;  %v2714_v22 = vld [vmem:[#allocation6 + $0x600] ss:$16 sps:$4 sm:$0xff]  }
  0x85   :  { %1373 = vmatpush1.bf16.msra.mxu0 %v2624_v21  ;;  %1456 = vmatprep.subr.bf16.mxu1 %v2635_v24  ;;  %v2708_v21 = vld [vmem:[#allocation6 + $0x208] ss:$16 sps:$4 sm:$0xff]  }
  0x86   :  { %1374 = vmatprep.subr.bf16.mxu0 %v2632_v23  ;;  %v2713_v23 = vld [vmem:[#allocation6 + $0x22c] ss:$16 sps:$4 sm:$0xff]   ;;  %v2711_v24 = vld [vmem:[#allocation6 + $0x228] ss:$16 sps:$4 sm:$0xff]  }
  0x88   :  { %1457 = vmatpush1.bf16.msra.mxu1 %v2633_v26  ;;  %v2717_v26 = vld [vmem:[#allocation6 + $0x248] ss:$16 sps:$4 sm:$0xff]  }
  0x89   :  { %1375 = vmatpush1.bf16.msra.mxu0 %v2630_v25  ;;  %1458 = vmatprep.subr.bf16.mxu1 %v2641_v28  ;;  %v2719_v25 = vld [vmem:[#allocation6 + $0x24c] ss:$16 sps:$4 sm:$0xff]  }
  0x8a   :  { %1376 = vmatprep.subr.bf16.mxu0 %v2638_v27  ;;  %v76_v27 = vld [vmem:[#allocation3 + $0x30] sm:$0xff] }
  0x8b   :  { %v2722_v28 = vld [vmem:[#allocation6 + $0x26c] ss:$16 sps:$4 sm:$0xff]  }
  0x8c   :  { %1459 = vmatpush1.bf16.msra.mxu1 %v2639_v30  ;;  %v3112_v30 = vpack.c.bf16 %v76_v27, %v76_v27  ;;  %v2846_v27 = vld [vmem:[#allocation8 + $0xc0] ss:$8 sps:$4 sm:$0xff]  }
  0x8d   :  { %1377 = vmatpush1.bf16.msra.mxu0 %v2636_v29  ;;  %1460 = vmatprep.subr.bf16.mxu1 %v2647_v32  ;;  %v2720_v29 = vld [vmem:[#allocation6 + $0x268] ss:$16 sps:$4 sm:$0xff]   ;;  %v2728_v32 = vld [vmem:[#allocation6 + $0x2ac] ss:$16 sps:$4 sm:$0xff]  }
  0x8e   :  { %1378 = vmatprep.subr.bf16.mxu0 %v2644_v31  ;;  %v2725_v31 = vld [vmem:[#allocation6 + $0x28c] ss:$16 sps:$4 sm:$0xff]  }
  0x90   :  { %1461 = vmatpush1.bf16.msra.mxu1 %v2645_v34  ;;  %v2731_v34 = vld [vmem:[#allocation6 + $0x2cc] ss:$16 sps:$4 sm:$0xff]  }
  0x91   :  { %1379 = vmatpush1.bf16.msra.mxu0 %v2642_v33  ;;  %1462 = vmatprep.subr.bf16.mxu1 %v2653_v36  ;;  %v2726_v33 = vld [vmem:[#allocation6 + $0x2a8] ss:$16 sps:$4 sm:$0xff]  }
  0x92   :  { %1380 = vmatprep.subr.bf16.mxu0 %v2650_v35  ;;  %v2734_v35 = vld [vmem:[#allocation6 + $0x2ec] ss:$16 sps:$4 sm:$0xff]   ;;  %v2810_v36 = vld [vmem:[#allocation8] ss:$8 sps:$4 sm:$0xff]  }
  0x94   :  { %1463 = vmatpush1.bf16.msra.mxu1 %v2651_v40  ;;  %v2732_v40 = vld [vmem:[#allocation6 + $0x2e8] ss:$16 sps:$4 sm:$0xff]  }
  0x95   :  { %1381 = vmatpush1.bf16.msra.mxu0 %v2648_v39  ;;  %1464 = vmatprep.subr.bf16.mxu1 %v2659_v42  ;;  %v2815_v39 = vld [vmem:[#allocation8 + $0x14] ss:$8 sps:$4 sm:$0xff]  }
  0x96   :  { %1382 = vmatprep.subr.bf16.mxu0 %v2656_v41  ;;  %v2813_v41 = vld [vmem:[#allocation8 + $0x10] ss:$8 sps:$4 sm:$0xff]   ;;  %v2737_v42 = vld [vmem:[#allocation6 + $0x30c] ss:$16 sps:$4 sm:$0xff]  }
  0x98   :  { %1465 = vmatpush1.bf16.msra.mxu1 %v2657_v44  ;;  %v2735_v44 = vld [vmem:[#allocation6 + $0x308] ss:$16 sps:$4 sm:$0xff]  }
  0x99   :  { %1383 = vmatpush1.bf16.msra.mxu0 %v2654_v43  ;;  %1466 = vmatprep.subr.bf16.mxu1 %v2665_v46  ;;  %v2818_v43 = vld [vmem:[#allocation8 + $0x24] ss:$8 sps:$4 sm:$0xff]  }
  0x9a   :  { %1384 = vmatprep.subr.bf16.mxu0 %v2662_v45  ;;  %v2816_v45 = vld [vmem:[#allocation8 + $0x20] ss:$8 sps:$4 sm:$0xff]   ;;  %v2740_v46 = vld [vmem:[#allocation6 + $0x32c] ss:$16 sps:$4 sm:$0xff]  }
  0x9c   :  { %1467 = vmatpush1.bf16.msra.mxu1 %v2663_v48  ;;  %v2738_v48 = vld [vmem:[#allocation6 + $0x328] ss:$16 sps:$4 sm:$0xff]  }
  0x9d   :  { %1385 = vmatpush1.bf16.msra.mxu0 %v2660_v47  ;;  %1468 = vmatprep.subr.bf16.mxu1 %v2671_v50  ;;  %v2821_v47 = vld [vmem:[#allocation8 + $0x34] ss:$8 sps:$4 sm:$0xff]  }
  0x9e   :  { %1386 = vmatprep.subr.bf16.mxu0 %v2668_v49  ;;  %v2819_v49 = vld [vmem:[#allocation8 + $0x30] ss:$8 sps:$4 sm:$0xff]   ;;  %v2743_v50 = vld [vmem:[#allocation6 + $0x34c] ss:$16 sps:$4 sm:$0xff]  }
  0xa0   :  { %1469 = vmatpush1.bf16.msra.mxu1 %v2669_v52  ;;  %v2741_v52 = vld [vmem:[#allocation6 + $0x348] ss:$16 sps:$4 sm:$0xff]  }
  0xa1   :  { %1387 = vmatpush1.bf16.msra.mxu0 %v2666_v51  ;;  %1470 = vmatprep.subr.bf16.mxu1 %v2677_v55  ;;  %v2824_v51 = vld [vmem:[#allocation8 + $0x44] ss:$8 sps:$4 sm:$0xff]  }
  0xa2   :  { %1388 = vmatprep.subr.bf16.mxu0 %v2674_v53  ;;  %v2822_v53 = vld [vmem:[#allocation8 + $0x40] ss:$8 sps:$4 sm:$0xff]   ;;  %v2746_v55 = vld [vmem:[#allocation6 + $0x36c] ss:$16 sps:$4 sm:$0xff]  }
  0xa4   :  { %1471 = vmatpush1.bf16.msra.mxu1 %v2675_v57  ;;  %v2744_v57 = vld [vmem:[#allocation6 + $0x368] ss:$16 sps:$4 sm:$0xff]  }
  0xa5   :  { %1389 = vmatpush1.bf16.msra.mxu0 %v2672_v56  ;;  %1472 = vmatprep.subr.bf16.mxu1 %v2683_v59  ;;  %v2827_v56 = vld [vmem:[#allocation8 + $0x54] ss:$8 sps:$4 sm:$0xff]  }
  0xa6   :  { %1390 = vmatprep.subr.bf16.mxu0 %v2680_v58  ;;  %v2825_v58 = vld [vmem:[#allocation8 + $0x50] ss:$8 sps:$4 sm:$0xff]   ;;  %v2749_v59 = vld [vmem:[#allocation6 + $0x38c] ss:$16 sps:$4 sm:$0xff]  }
  0xa8   :  { %1473 = vmatpush1.bf16.msra.mxu1 %v2681_v61  ;;  %v2747_v61 = vld [vmem:[#allocation6 + $0x388] ss:$16 sps:$4 sm:$0xff]  }
  0xa9   :  { %1391 = vmatpush1.bf16.msra.mxu0 %v2678_v60  ;;  %1474 = vmatprep.subr.bf16.mxu1 %v2689_v63  ;;  %v2830_v60 = vld [vmem:[#allocation8 + $0x64] ss:$8 sps:$4 sm:$0xff]  }
  0xaa   :  { %1392 = vmatprep.subr.bf16.mxu0 %v2686_v62  ;;  %v2828_v62 = vld [vmem:[#allocation8 + $0x60] ss:$8 sps:$4 sm:$0xff]   ;;  %v2752_v63 = vld [vmem:[#allocation6 + $0x3ac] ss:$16 sps:$4 sm:$0xff]  }
  0xac   :  { %1475 = vmatpush1.bf16.msra.mxu1 %v2687_v1  ;;  %v2750_v1 = vld [vmem:[#allocation6 + $0x3a8] ss:$16 sps:$4 sm:$0xff]  }
  0xad   :  { %1393 = vmatpush1.bf16.msra.mxu0 %v2684_v0  ;;  %1476 = vmatprep.subr.bf16.mxu1 %v2695_v3  ;;  %v2833_v0 = vld [vmem:[#allocation8 + $0x74] ss:$8 sps:$4 sm:$0xff]  }
  0xae   :  { %1394 = vmatprep.subr.bf16.mxu0 %v2692_v2  ;;  %v2831_v2 = vld [vmem:[#allocation8 + $0x70] ss:$8 sps:$4 sm:$0xff]   ;;  %v2755_v3 = vld [vmem:[#allocation6 + $0x3cc] ss:$16 sps:$4 sm:$0xff]  }
  0xb0   :  { %1477 = vmatpush1.bf16.msra.mxu1 %v2693_v5  ;;  %v2753_v5 = vld [vmem:[#allocation6 + $0x3c8] ss:$16 sps:$4 sm:$0xff]  }
  0xb1   :  { %1395 = vmatpush1.bf16.msra.mxu0 %v2690_v4  ;;  %1478 = vmatprep.subr.bf16.mxu1 %v2701_v7  ;;  %v2836_v4 = vld [vmem:[#allocation8 + $0x84] ss:$8 sps:$4 sm:$0xff]  }
  0xb2   :  { %1396 = vmatprep.subr.bf16.mxu0 %v2698_v6  ;;  %v2834_v6 = vld [vmem:[#allocation8 + $0x80] ss:$8 sps:$4 sm:$0xff]   ;;  %v2758_v7 = vld [vmem:[#allocation6 + $0x3ec] ss:$16 sps:$4 sm:$0xff]  }
  0xb4   :  { %1479 = vmatpush1.bf16.msra.mxu1 %v2699_v9  ;;  %v2756_v9 = vld [vmem:[#allocation6 + $0x3e8] ss:$16 sps:$4 sm:$0xff]  }
  0xb5   :  { %1397 = vmatpush1.bf16.msra.mxu0 %v2696_v8  ;;  %1480 = vmatprep.subr.bf16.mxu1 %v2707_v12  ;;  %v2839_v8 = vld [vmem:[#allocation8 + $0x94] ss:$8 sps:$4 sm:$0xff]  }
  0xb6   :  { %1398 = vmatprep.subr.bf16.mxu0 %v2704_v11  ;;  %v2837_v11 = vld [vmem:[#allocation8 + $0x90] ss:$8 sps:$4 sm:$0xff]   ;;  %v2761_v12 = vld [vmem:[#allocation6 + $0x40c] ss:$16 sps:$4 sm:$0xff]  }
  0xb8   :  { %1481 = vmatpush1.bf16.msra.mxu1 %v2705_v15  ;;  %v2759_v15 = vld [vmem:[#allocation6 + $0x408] ss:$16 sps:$4 sm:$0xff]  }
  0xb9   :  { %1399 = vmatpush1.bf16.msra.mxu0 %v2702_v14  ;;  %1491 = vmatprep.subr.bf16.mxu1 %v2710_v17  ;;  %v2842_v14 = vld [vmem:[#allocation8 + $0xa4] ss:$8 sps:$4 sm:$0xff]   ;;  %v2840_v17 = vld [vmem:[#allocation8 + $0xa0] ss:$8 sps:$4 sm:$0xff]  }
  0xba   :  { %1409 = vmatprep.subr.bf16.mxu0 %v2716_v18  ;;  %v2845_v18 = vld [vmem:[#allocation8 + $0xb4] ss:$8 sps:$4 sm:$0xff]  }
  0xbb   :  { %1483 = vmatmul.mubr.bf16.vlgmr.msra.gmra.mrb[4].mxu1 %v3096_v10  ;;  %v2723_v10 = vld [vmem:[#allocation6 + $0x288] ss:$16 sps:$4 sm:$0xff]  }
  0xbc   :  { %1401 = vmatmul.mubr.bf16.vlgmr.msra.gmra.mrb[0].mxu0 %v3106_v20  ;;  %1492 = vmatpush1.bf16.msra.mxu1 %v2708_v21  ;;  %v2762_v21 = vld [vmem:[#allocation6 + $0x428] ss:$16 sps:$4 sm:$0xff]  }
  0xbd   :  { %1410 = vmatpush1.bf16.msra.mxu0 %v2714_v22  ;;  %1493 = vmatprep.subr.bf16.mxu1 %v2713_v23  ;;  %v2767_v22 = vld [vmem:[#allocation6 + $0x44c] ss:$16 sps:$4 sm:$0xff]   ;;  %v2843_v23 = vld [vmem:[#allocation8 + $0xb0] ss:$8 sps:$4 sm:$0xff]  }
  0xbe   :  { %1441 = vmatprep.mubr.bf16.mxu0 %v3007_v19  ;;  %1523 = vmatprep.mubr.bf16.mxu1 %v3092_v54  ;;  %v2729_v54 = vld [vmem:[#allocation6 + $0x2c8] ss:$16 sps:$4 sm:$0xff]  }
  0xbf   :  { %2026 = vmatprep.subr.bf16.mxu0 %v2812_v37  ;;  %v2783_v37 = vld [vmem:[#allocation6 + $0x508] ss:$16 sps:$4 sm:$0xff]  }
  0xc0   :  { %1494 = vmatpush1.bf16.msra.mxu1 %v2711_v24  ;;  %v2848_v24 = vld [vmem:[#allocation8 + $0xc4] ss:$8 sps:$4 sm:$0xff]  }
  0xc1   :  { %1495 = vmatprep.subr.bf16.mxu1 %v2719_v25  ;;  %v2765_v25 = vld [vmem:[#allocation6 + $0x448] ss:$16 sps:$4 sm:$0xff]  }
  0xc4   :  { %1496 = vmatpush1.bf16.msra.mxu1 %v2717_v26  ;;  %v2770_v26 = vld [vmem:[#allocation6 + $0x46c] ss:$16 sps:$4 sm:$0xff]  }
  0xc5   :  { %1497 = vmatprep.subr.bf16.mxu1 %v2722_v28  ;;  %v2851_v28 = vld [vmem:[#allocation8 + $0xd4] ss:$8 sps:$4 sm:$0xff]  }
  0xc8   :  { %2406 = vmatmul.mubr.msk.bf16.vlgmr.msra.gmra.mrb[0].mxu0 %vm1282_vm0, %v3112_v30  ;;  %1498 = vmatpush1.bf16.msra.mxu1 %v2720_v29  ;;  %v2773_v29 = vld [vmem:[#allocation6 + $0x48c] ss:$16 sps:$4 sm:$0xff]  }
  0xc9   :  { %1499 = vmatprep.subr.bf16.mxu1 %v2725_v31  ;;  %2027 = vmatpush1.bf16.msra.mxu0 %v2810_v36  ;;  %v2771_v31 = vld [vmem:[#allocation6 + $0x488] ss:$16 sps:$4 sm:$0xff]   ;;  %v2785_v36 = vld [vmem:[#allocation6 + $0x50c] ss:$16 sps:$4 sm:$0xff]  }
  0xca   :  { %2028 = vmatprep.subr.bf16.mxu0 %v2815_v39  ;;  %v2788_v39 = vld [vmem:[#allocation6 + $0x52c] ss:$16 sps:$4 sm:$0xff]  }
  0xcc   :  { %1500 = vmatpush1.bf16.msra.mxu1 %v2723_v10  ;;  %v2776_v10 = vld [vmem:[#allocation6 + $0x4ac] ss:$16 sps:$4 sm:$0xff]  }
  0xcd   :  { %1501 = vmatprep.subr.bf16.mxu1 %v2728_v32  ;;  %2029 = vmatpush1.bf16.msra.mxu0 %v2813_v41  ;;  %v2774_v32 = vld [vmem:[#allocation6 + $0x4a8] ss:$16 sps:$4 sm:$0xff]  }
  0xce   :  { %2030 = vmatprep.subr.bf16.mxu0 %v2818_v43  ;;  %v2852_v41 = vld [vmem:[#allocation8 + $0xe0] ss:$8 sps:$4 sm:$0xff]   ;;  %v2791_v43 = vld [vmem:[#allocation6 + $0x54c] ss:$16 sps:$4 sm:$0xff]  }
  0xd0   :  { %1502 = vmatpush1.bf16.msra.mxu1 %v2726_v33  ;;  %v2779_v33 = vld [vmem:[#allocation6 + $0x4cc] ss:$16 sps:$4 sm:$0xff]  }
  0xd1   :  { %1503 = vmatprep.subr.bf16.mxu1 %v2731_v34  ;;  %2031 = vmatpush1.bf16.msra.mxu0 %v2816_v45  ;;  %v2777_v34 = vld [vmem:[#allocation6 + $0x4c8] ss:$16 sps:$4 sm:$0xff]  }
  0xd2   :  { %2032 = vmatprep.subr.bf16.mxu0 %v2821_v47  ;;  %v2855_v45 = vld [vmem:[#allocation8 + $0xf0] ss:$8 sps:$4 sm:$0xff]   ;;  %v2794_v47 = vld [vmem:[#allocation6 + $0x56c] ss:$16 sps:$4 sm:$0xff]  }
  0xd4   :  { %1504 = vmatpush1.bf16.msra.mxu1 %v2729_v54  ;;  %v2782_v54 = vld [vmem:[#allocation6 + $0x4ec] ss:$16 sps:$4 sm:$0xff]  }
  0xd5   :  { %1505 = vmatprep.subr.bf16.mxu1 %v2734_v35  ;;  %2033 = vmatpush1.bf16.msra.mxu0 %v2819_v49  ;;  %v2780_v35 = vld [vmem:[#allocation6 + $0x4e8] ss:$16 sps:$4 sm:$0xff]   ;;  %v2860_v49 = vld [vmem:[#allocation8 + $0x104] ss:$8 sps:$4 sm:$0xff]  }
  0xd6   :  { %2034 = vmatprep.subr.bf16.mxu0 %v2824_v51  ;;  %v2795_v51 = vld [vmem:[#allocation6 + $0x588] ss:$16 sps:$4 sm:$0xff]  }
  0xd8   :  { %1506 = vmatpush1.bf16.msra.mxu1 %v2732_v40  ;;  %v2854_v40 = vld [vmem:[#allocation8 + $0xe4] ss:$8 sps:$4 sm:$0xff]  }
  0xd9   :  { %1507 = vmatprep.subr.bf16.mxu1 %v2737_v42  ;;  %2035 = vmatpush1.bf16.msra.mxu0 %v2822_v53  ;;  %v2786_v42 = vld [vmem:[#allocation6 + $0x528] ss:$16 sps:$4 sm:$0xff]  }
  0xda   :  { %2036 = vmatprep.subr.bf16.mxu0 %v2827_v56  ;;  %v2798_v53 = vld [vmem:[#allocation6 + $0x5a8] ss:$16 sps:$4 sm:$0xff]  }
  0xdb   :  { %v2801_v56 = vld [vmem:[#allocation6 + $0x5c8] ss:$16 sps:$4 sm:$0xff]  }
  0xdc   :  { %1508 = vmatpush1.bf16.msra.mxu1 %v2735_v44  ;;  %v2857_v44 = vld [vmem:[#allocation8 + $0xf4] ss:$8 sps:$4 sm:$0xff]  }
  0xdd   :  { %1509 = vmatprep.subr.bf16.mxu1 %v2740_v46  ;;  %2037 = vmatpush1.bf16.msra.mxu0 %v2825_v58  ;;  %v2789_v46 = vld [vmem:[#allocation6 + $0x548] ss:$16 sps:$4 sm:$0xff]  }
  0xde   :  { %2038 = vmatprep.subr.bf16.mxu0 %v2830_v60  ;;  %v2804_v58 = vld [vmem:[#allocation6 + $0x5e8] ss:$16 sps:$4 sm:$0xff]  }
  0xdf   :  { %v2807_v60 = vld [vmem:[#allocation6 + $0x608] ss:$16 sps:$4 sm:$0xff]  }
  0xe0   :  { %1510 = vmatpush1.bf16.msra.mxu1 %v2738_v48  ;;  %v2792_v48 = vld [vmem:[#allocation6 + $0x568] ss:$16 sps:$4 sm:$0xff]  }
  0xe1   :  { %1511 = vmatprep.subr.bf16.mxu1 %v2743_v50  ;;  %2039 = vmatpush1.bf16.msra.mxu0 %v2828_v62  ;;  %v2797_v50 = vld [vmem:[#allocation6 + $0x58c] ss:$16 sps:$4 sm:$0xff]  }
  0xe2   :  { %2040 = vmatprep.subr.bf16.mxu0 %v2833_v0 }
  0xe4   :  { %1512 = vmatpush1.bf16.msra.mxu1 %v2741_v52  ;;  %v2800_v52 = vld [vmem:[#allocation6 + $0x5ac] ss:$16 sps:$4 sm:$0xff]  }
  0xe5   :  { %1513 = vmatprep.subr.bf16.mxu1 %v2746_v55  ;;  %2041 = vmatpush1.bf16.msra.mxu0 %v2831_v2  ;;  %v2803_v55 = vld [vmem:[#allocation6 + $0x5cc] ss:$16 sps:$4 sm:$0xff]  }
  0xe6   :  { %2042 = vmatprep.subr.bf16.mxu0 %v2836_v4 }
  0xe8   :  { %1514 = vmatpush1.bf16.msra.mxu1 %v2744_v57  ;;  %v2806_v57 = vld [vmem:[#allocation6 + $0x5ec] ss:$16 sps:$4 sm:$0xff]  }
  0xe9   :  { %1515 = vmatprep.subr.bf16.mxu1 %v2749_v59  ;;  %2043 = vmatpush1.bf16.msra.mxu0 %v2834_v6  ;;  %v2809_v59 = vld [vmem:[#allocation6 + $0x60c] ss:$16 sps:$4 sm:$0xff]  }
  0xea   :  { %2044 = vmatprep.subr.bf16.mxu0 %v2839_v8 }
  0xec   :  { %1516 = vmatpush1.bf16.msra.mxu1 %v2747_v61 }
  0xed   :  { %1517 = vmatprep.subr.bf16.mxu1 %v2752_v63  ;;  %2045 = vmatpush1.bf16.msra.mxu0 %v2837_v11 }
  0xee   :  { %2046 = vmatprep.subr.bf16.mxu0 %v2842_v14 }
  0xf0   :  { %1518 = vmatpush1.bf16.msra.mxu1 %v2750_v1  ;;  %v282_v1 = vlaneseq }
  0xf1   :  { %1519 = vmatprep.subr.bf16.mxu1 %v2755_v3  ;;  %2047 = vmatpush1.bf16.msra.mxu0 %v2840_v17 }
  0xf2   :  { %2048 = vmatprep.subr.bf16.mxu0 %v2845_v18  ;;  %v3122_v2 = vshrl.u32 %v282_v1, 7 }
  0xf4   :  { %1520 = vmatpush1.bf16.msra.mxu1 %v2753_v5  ;;  %v3125_v3 = vsub.s32 0, %v3122_v2 }
  0xf5   :  { %1521 = vmatprep.subr.bf16.mxu1 %v2758_v7  ;;  %2049 = vmatpush1.bf16.msra.mxu0 %v2843_v23  ;;  %v2863_v23 = vld [vmem:[#allocation8 + $0x114] ss:$8 sps:$4 sm:$0xff]  }
  0xf6   :  { %2050 = vmatprep.subr.bf16.mxu0 %v2848_v24 }
  0xf8   :  { %1522 = vmatpush1.bf16.msra.mxu1 %v2756_v9 }
  0xf9   :  { %1532 = vmatprep.subr.bf16.mxu1 %v2761_v12  ;;  %2051 = vmatpush1.bf16.msra.mxu0 %v2846_v27  ;;  %v2864_v27 = vld [vmem:[#allocation8 + $0x120] ss:$8 sps:$4 sm:$0xff]  }
  0xfa   :  { %2052 = vmatprep.subr.bf16.mxu0 %v2851_v28  ;;  %v2869_v28 = vld [vmem:[#allocation8 + $0x134] ss:$8 sps:$4 sm:$0xff]  }
  0xfb   :  { %1524 = vmatmul.mubr.bf16.vlgmr.msra.gmra.mrb[4].mxu1 %v3098_v13  ;;  %v2768_v13 = vld [vmem:[#allocation6 + $0x468] ss:$16 sps:$4 sm:$0xff]  }
  0xfc   :  { %1533 = vmatpush1.bf16.msra.mxu1 %v2759_v15  ;;  %1564 = vmatprep.mubr.bf16.mxu1 %v3103_v38  ;;  %v2849_v38 = vld [vmem:[#allocation8 + $0xd0] ss:$8 sps:$4 sm:$0xff]  }
  0xfd   :  { %1534 = vmatprep.subr.bf16.mxu1 %v2764_v16  ;;  %2053 = vmatpush1.bf16.msra.mxu0 %v2849_v38  ;;  %v2870_v38 = vld [vmem:[#allocation8 + $0x140] ss:$8 sps:$4 sm:$0xff]  }
  0xfe   :  { %2054 = vmatprep.subr.bf16.mxu0 %v2854_v40  ;;  %v2890_v40 = vld [vmem:[#allocation8 + $0x1a4] ss:$8 sps:$4 sm:$0xff]  }
 0x100   :  { %1535 = vmatpush1.bf16.msra.mxu1 %v2762_v21  ;;  %v2858_v21 = vld [vmem:[#allocation8 + $0x100] ss:$8 sps:$4 sm:$0xff]  }
 0x101   :  { %1536 = vmatprep.subr.bf16.mxu1 %v2767_v22  ;;  %2055 = vmatpush1.bf16.msra.mxu0 %v2852_v41  ;;  %v2888_v41 = vld [vmem:[#allocation8 + $0x1a0] ss:$8 sps:$4 sm:$0xff]  }
 0x102   :  { %2056 = vmatprep.subr.bf16.mxu0 %v2857_v44  ;;  %v2896_v44 = vld [vmem:[#allocation8 + $0x1c4] ss:$8 sps:$4 sm:$0xff]  }
 0x104   :  { %1537 = vmatpush1.bf16.msra.mxu1 %v2765_v25  ;;  %v2861_v25 = vld [vmem:[#allocation8 + $0x110] ss:$8 sps:$4 sm:$0xff]  }
 0x105   :  { %1538 = vmatprep.subr.bf16.mxu1 %v2770_v26  ;;  %2057 = vmatpush1.bf16.msra.mxu0 %v2855_v45  ;;  %v2866_v26 = vld [vmem:[#allocation8 + $0x124] ss:$8 sps:$4 sm:$0xff]   ;;  %v2894_v45 = vld [vmem:[#allocation8 + $0x1c0] ss:$8 sps:$4 sm:$0xff]  }
 0x106   :  { %2067 = vmatprep.subr.bf16.mxu0 %v2860_v49  ;;  %v2900_v49 = vld [vmem:[#allocation8 + $0x1e0] ss:$8 sps:$4 sm:$0xff]  }
 0x108   :  { %1539 = vmatpush1.bf16.msra.mxu1 %v2768_v13  ;;  %v2867_v13 = vld [vmem:[#allocation8 + $0x130] ss:$8 sps:$4 sm:$0xff]  }
 0x109   :  { %1540 = vmatprep.subr.bf16.mxu1 %v2773_v29  ;;  %v2872_v29 = vld [vmem:[#allocation8 + $0x144] ss:$8 sps:$4 sm:$0xff]  }
 0x10c   :  { %1541 = vmatpush1.bf16.msra.mxu1 %v2771_v31  ;;  %v2875_v31 = vld [vmem:[#allocation8 + $0x154] ss:$8 sps:$4 sm:$0xff]  }
 0x10d   :  { %1542 = vmatprep.subr.bf16.mxu1 %v2776_v10  ;;  %v2873_v10 = vld [vmem:[#allocation8 + $0x150] ss:$8 sps:$4 sm:$0xff]  }
 0x110   :  { %1543 = vmatpush1.bf16.msra.mxu1 %v2774_v32  ;;  %v2878_v32 = vld [vmem:[#allocation8 + $0x164] ss:$8 sps:$4 sm:$0xff]  }
 0x111   :  { %1544 = vmatprep.subr.bf16.mxu1 %v2779_v33  ;;  %v2876_v33 = vld [vmem:[#allocation8 + $0x160] ss:$8 sps:$4 sm:$0xff]  }
 0x114   :  { %1545 = vmatpush1.bf16.msra.mxu1 %v2777_v34  ;;  %v2881_v34 = vld [vmem:[#allocation8 + $0x174] ss:$8 sps:$4 sm:$0xff]  }
 0x115   :  { %1546 = vmatprep.subr.bf16.mxu1 %v2782_v54  ;;  %v2879_v54 = vld [vmem:[#allocation8 + $0x170] ss:$8 sps:$4 sm:$0xff]  }
 0x118   :  { %1547 = vmatpush1.bf16.msra.mxu1 %v2780_v35  ;;  %v2884_v35 = vld [vmem:[#allocation8 + $0x184] ss:$8 sps:$4 sm:$0xff]  }
 0x119   :  { %1548 = vmatprep.subr.bf16.mxu1 %v2785_v36  ;;  %v2882_v36 = vld [vmem:[#allocation8 + $0x180] ss:$8 sps:$4 sm:$0xff]  }
 0x11c   :  { %1549 = vmatpush1.bf16.msra.mxu1 %v2783_v37  ;;  %v2887_v37 = vld [vmem:[#allocation8 + $0x194] ss:$8 sps:$4 sm:$0xff]  }
 0x11d   :  { %1550 = vmatprep.subr.bf16.mxu1 %v2788_v39  ;;  %v2885_v39 = vld [vmem:[#allocation8 + $0x190] ss:$8 sps:$4 sm:$0xff]  }
 0x120   :  { %1551 = vmatpush1.bf16.msra.mxu1 %v2786_v42  ;;  %v2893_v42 = vld [vmem:[#allocation8 + $0x1b4] ss:$8 sps:$4 sm:$0xff]  }
 0x121   :  { %1552 = vmatprep.subr.bf16.mxu1 %v2791_v43  ;;  %v2891_v43 = vld [vmem:[#allocation8 + $0x1b0] ss:$8 sps:$4 sm:$0xff]  }
 0x124   :  { %1553 = vmatpush1.bf16.msra.mxu1 %v2789_v46  ;;  %v2899_v46 = vld [vmem:[#allocation8 + $0x1d4] ss:$8 sps:$4 sm:$0xff]  }
 0x125   :  { %1554 = vmatprep.subr.bf16.mxu1 %v2794_v47  ;;  %v2897_v47 = vld [vmem:[#allocation8 + $0x1d0] ss:$8 sps:$4 sm:$0xff]  }
 0x128   :  { %1555 = vmatpush1.bf16.msra.mxu1 %v2792_v48  ;;  %v2902_v48 = vld [vmem:[#allocation8 + $0x1e4] ss:$8 sps:$4 sm:$0xff]  }
 0x129   :  { %1556 = vmatprep.subr.bf16.mxu1 %v2797_v50  ;;  %v2905_v50 = vld [vmem:[#allocation8 + $0x1f4] ss:$8 sps:$4 sm:$0xff]  }
 0x12c   :  { %1557 = vmatpush1.bf16.msra.mxu1 %v2795_v51  ;;  %v2903_v51 = vld [vmem:[#allocation8 + $0x1f0] ss:$8 sps:$4 sm:$0xff]  }
 0x12d   :  { %1558 = vmatprep.subr.bf16.mxu1 %v2800_v52  ;;  %v292_v52 = vsub.s32 2, %v3122_v2 }
 0x130   :  { %1559 = vmatpush1.bf16.msra.mxu1 %v2798_v53  ;;  %v296_v53 = vsub.s32 3, %v3122_v2 }
 0x131   :  { %1560 = vmatprep.subr.bf16.mxu1 %v2803_v55 }
 0x134   :  { %1561 = vmatpush1.bf16.msra.mxu1 %v2801_v56 }
 0x135   :  { %1562 = vmatprep.subr.bf16.mxu1 %v2806_v57 }
 0x138   :  { %1563 = vmatpush1.bf16.msra.mxu1 %v2804_v58 }
 0x139   :  { %1573 = vmatprep.subr.bf16.mxu1 %v2809_v59 }
 0x13b   :  { %1565 = vmatmul.mubr.bf16.vlgmr.msra.gmra.mrb[4].mxu1 %v3106_v20  ;;  %v3130_v20 = vld [vmem:[%s3167_s2] sm:$0xf] }
 0x13c   :  { %1574 = vmatpush1.bf16.msra.mxu1 %v2807_v60  ;;  %1605 = vmatprep.mubr.bf16.mxu1 %v3007_v19  ;;  %v288_v19 = vsub.s32 1, %v3122_v2  ;;  %v293_v55 = vrot.slane %v3130_v20, %v292_v52  ;;  %v297_v56 = vrot.slane %v3130_v20, %v296_v53 }
 0x13e   :  { %v289_v4 = vrot.slane %v3130_v20, %v288_v19 }
 0x147   :  { %2407 = vmatmul.mubr.msk.bf16.vlgmr.msra.gmra.mrb[4].mxu1 %vm1282_vm0, %v3112_v30  ;;  %v285_v30 = vrot.slane %v3130_v20, %v3125_v3  ;;  %v2472_v20 = vld.sshfl [vmem:[%s3170_s5] sm:$0x11 pattern:$0x75316420] }
 0x14e   :  { %v1320_v61 = vpop.f32.mrb[0].mxu1 }
 0x14f   :  { %v1322_v62 = vpop.f32.mrb[1].mxu1  ;;  %v1321_v5 = vadd.f32 %v1320_v61, %v285_v30 }
 0x150   :  { %v1324_v63 = vpop.f32.mrb[2].mxu1  ;;  %v1323_v6 = vadd.f32 %v1322_v62, %v289_v4 }
 0x151   :  { %v1325_v0 = vpop.f32.mrb[3].mxu1 }
 0x19b   :  { %v1443_v7 = vpop.f32.mrb[0].mxu0 }
 0x19c   :  { %v2474_v8 = vadd.f32 %v1443_v7, %v1321_v5  ;;  %v1445_v9 = vpop.f32.mrb[1].mxu0 }
 0x19d   :  { %v2476_v11 = vadd.f32 %v1445_v9, %v1323_v6  ;;  %v1447_v12 = vpop.f32.mrb[2].mxu0  ;;  %v3008_v6 = vmov 1966171168   ;;  %v2135_v9 = vcombine.high %v2472_v20, %v2472_v20 }
 0x19e   :  { %v1614_v14 = vpack.c.bf16 %v2474_v8, %v2474_v8  ;;  %v1448_v15 = vpop.f32.mrb[3].mxu0  ;;  %v2137_v7 = vunpack.c.l.s4 %v3008_v6 }
 0x19f   :  { %v1615_v16 = vpack.c.bf16 %v2476_v11, %v2476_v11  ;;  %v2117_v15 = vld [vmem:[#allocation2] sm:$0x1] }
 0x1a0   :  { %v1622_v17 = vmul.bf16 1045249613, %v1614_v14  ;;  %vm1618_vm1 = vcmp.ge.bf16.partialorder %v1614_v14, 0  ;;  %v2138_v8 = vunpack.c.0.s8 %v2137_v7  ;;  %2120 = vperm.xlu0 %2515, %v2117_v15  }
 0x1a1   :  { %v1623_v18 = vmul.bf16 1045249613, %v1615_v16  ;;  %vm1619_vm2 = vcmp.ge.bf16.partialorder %v1615_v16, 0 }
 0x1a2   :  { %v1626_v24 = vsel %vm1618_vm1, %v1614_v14, %v1622_v17  ;;  %v2141_v11 = vsub.s32 %v2138_v8, %v3122_v2 }
 0x1a3   :  { %v1627_v22 = vsel %vm1619_vm2, %v1615_v16, %v1623_v18  ;;  %v1694_v16 = vld [vmem:[%s3169_s4] sm:$0x3]  ;;  %s3009_s4 = smov [#allocation9]  }
 0x1a4   :  { %2058 = vmatprep.mubr.bf16.mxu0 %v1627_v22  ;;  %v2149_v12 = vrot.slane %v2135_v9, %v2141_v11  ;;  %v2142_v14 = vrot.slane %v2472_v20, %v2141_v11  ;;  %v1699_v17 = vrot.slane %v1694_v16, %v3125_v3  ;;  %v1703_v18 = vrot.slane %v1694_v16, %v288_v19  ;;  %s2200_s5 = sshll.u32 %s3009_s4, 4  ;;  %s2201_s5 = int_to_ptr.vmem [resolvable:$true] %s2200_s5 }
 0x1a5   :  { %2059 = vmatmul.mubr.bf16.vlgmr.msra.gmra.mrb[4].mxu0 %v1626_v24  ;;  %s2972_s20 = scalar_lea.vmem %s2201_s5, 16  ;;  %s2976_s21 = scalar_lea.vmem %s2201_s5, 32 }
 0x1a6   :  { %2068 = vmatpush1.bf16.msra.mxu0 %v2858_v21  ;;  %2184 = vmatprep.mubr.bf16.mxu1 %v2149_v12  ;;  %p2973_p10 = scmp.ne.s32.totalorder %s2201_s5, %s2972_s20  ;;  %p2977_p11 = scmp.lt.s32.totalorder %s2201_s5, %s2201_s5 }
 0x1a7   :  { %2069 = vmatprep.subr.bf16.mxu0 %v2863_v23  ;;  %p2978_p12 = scmp.lt.s32.totalorder %s2976_s21, %s2972_s20 }
 0x1a9   :  { %p2979_p13 = por %p2978_p12, %p2977_p11 }
 0x1aa   :  { %2070 = vmatpush1.bf16.msra.mxu0 %v2861_v25 }
 0x1ab   :  { %2071 = vmatprep.subr.bf16.mxu0 %v2866_v26  ;;  %p2980_p0 = pnand %p2979_p13, %p2973_p10 }
 0x1ae   :  { %2072 = vmatpush1.bf16.msra.mxu0 %v2864_v27 }
 0x1af   :  { %2073 = vmatprep.subr.bf16.mxu0 %v2869_v28 }
 0x1b2   :  { %2074 = vmatpush1.bf16.msra.mxu0 %v2867_v13 }
 0x1b3   :  { %2075 = vmatprep.subr.bf16.mxu0 %v2872_v29 }
 0x1b6   :  { %2076 = vmatpush1.bf16.msra.mxu0 %v2870_v38 }
 0x1b7   :  { %2077 = vmatprep.subr.bf16.mxu0 %v2875_v31 }
 0x1ba   :  { %2078 = vmatpush1.bf16.msra.mxu0 %v2873_v10 }
 0x1bb   :  { %2079 = vmatprep.subr.bf16.mxu0 %v2878_v32 }
 0x1be   :  { %2080 = vmatpush1.bf16.msra.mxu0 %v2876_v33 }
 0x1bf   :  { %2081 = vmatprep.subr.bf16.mxu0 %v2881_v34 }
 0x1c2   :  { %2082 = vmatpush1.bf16.msra.mxu0 %v2879_v54 }
 0x1c3   :  { %2083 = vmatprep.subr.bf16.mxu0 %v2884_v35 }
 0x1c6   :  { %2084 = vmatpush1.bf16.msra.mxu0 %v2882_v36 }
 0x1c7   :  { %2085 = vmatprep.subr.bf16.mxu0 %v2887_v37 }
 0x1ca   :  { %2086 = vmatpush1.bf16.msra.mxu0 %v2885_v39 }
 0x1cb   :  { %2087 = vmatprep.subr.bf16.mxu0 %v2890_v40 }
 0x1ce   :  { %2088 = vmatpush1.bf16.msra.mxu0 %v2888_v41 }
 0x1cf   :  { %2089 = vmatprep.subr.bf16.mxu0 %v2893_v42 }
 0x1d2   :  { %2090 = vmatpush1.bf16.msra.mxu0 %v2891_v43 }
 0x1d3   :  { %2091 = vmatprep.subr.bf16.mxu0 %v2896_v44 }
 0x1d6   :  { %2092 = vmatpush1.bf16.msra.mxu0 %v2894_v45 }
 0x1d7   :  { %2093 = vmatprep.subr.bf16.mxu0 %v2899_v46 }
 0x1da   :  { %2094 = vmatpush1.bf16.msra.mxu0 %v2897_v47 }
 0x1db   :  { %2095 = vmatprep.subr.bf16.mxu0 %v2902_v48 }
 0x1de   :  { %2096 = vmatpush1.bf16.msra.mxu0 %v2900_v49 }
 0x1df   :  { %2097 = vmatprep.subr.bf16.mxu0 %v2905_v50 }
 0x1e2   :  { %2098 = vmatpush1.bf16.msra.mxu0 %v2903_v51 }
 0x21a   :  { %v1607_v57 = vpop.f32.mrb[4].mxu1 }
 0x21b   :  { %v2477_v58 = vadd.f32 %v1607_v57, %v293_v55  ;;  %v1609_v59 = vpop.f32.mrb[5].mxu1 }
 0x21c   :  { %v2478_v60 = vadd.f32 %v1609_v59, %v297_v56  ;;  %v1611_v61 = vpop.f32.mrb[6].mxu1 }
 0x21d   :  { %v1616_v62 = vpack.c.bf16 %v2477_v58, %v2477_v58  ;;  %v1612_v63 = vpop.f32.mrb[7].mxu1 }
 0x21e   :  { %v1617_v0 = vpack.c.bf16 %v2478_v60, %v2478_v60 }
 0x21f   :  { %v1624_v1 = vmul.bf16 1045249613, %v1616_v62  ;;  %vm1620_vm3 = vcmp.ge.bf16.partialorder %v1616_v62, 0  ;;  %v2121_v10 = vpop.permute.xlu0 %2120 }
 0x220   :  { %v1625_v30 = vmul.bf16 1045249613, %v1617_v0  ;;  %vm1621_vm4 = vcmp.ge.bf16.partialorder %v1617_v0, 0  ;;  %v2126_v2 = vrot.slane %v2121_v10, %v3125_v3 }
 0x221   :  { %v1628_v5 = vsel %vm1620_vm3, %v1616_v62, %v1624_v1 }
 0x222   :  { %v1629_v4 = vsel %vm1621_vm4, %v1617_v0, %v1625_v30 }
 0x223   :  { %2099 = vmatprep.mubr.bf16.mxu0 %v1629_v4 }
 0x224   :  { %2100 = vmatmul.mubr.bf16.vlgmr.msra.gmra.mrb[4].mxu0 %v1628_v5 }
 0x2f7   :  { %v2101_v21 = vpop.f32.mrb[4].mxu0 }
 0x2f8   :  { %v2479_v22 = vadd.f32 %v2101_v21, %v1699_v17  ;;  %v2103_v23 = vpop.f32.mrb[5].mxu0 }
 0x2f9   :  { %v2480_v24 = vadd.f32 %v2103_v23, %v1703_v18  ;;  %v2105_v25 = vpop.f32.mrb[6].mxu0 }
 0x2fa   :  { %v2108_v26 = vpack.c.bf16 %v2479_v22, %v2479_v22  ;;  %v2106_v27 = vpop.f32.mrb[7].mxu0 }
 0x2fb   :  { %v2109_v28 = vpack.c.bf16 %v2480_v24, %v2480_v24 }
 0x2fc   :  { %v2112_v13 = vmul.bf16 1045249613, %v2108_v26  ;;  %vm2110_vm5 = vcmp.ge.bf16.partialorder %v2108_v26, 0 }
 0x2fd   :  { %v2113_v29 = vmul.bf16 1045249613, %v2109_v28  ;;  %vm2111_vm6 = vcmp.ge.bf16.partialorder %v2109_v28, 0 }
 0x2fe   :  { %v2114_v31 = vsel %vm2110_vm5, %v2108_v26, %v2112_v13 }
 0x2ff   :  { %v2115_v38 = vsel %vm2111_vm6, %v2109_v28, %v2113_v29 }
 0x300   :  { %2152 = vmatprep.subr.bf16.mxu1 %v2115_v38 }
 0x301   :  { %2153 = vmatpush1.bf16.xpose.msra.mxu1 %v2114_v31 }
 0x308   :  { %2185 = vmatmul.mubr.bf16.vlgmr.msra.gmra.mrb[8].mxu1 %v2142_v14 }
 0x3db   :  { %v2186_v19 = vpop.f32.mrb[8].mxu1 }
 0x3dc   :  { %v2187_v32 = vadd.f32 %v2186_v19, %v2126_v2  ;;  %v2188_v33 = vpop.f32.mrb[9].mxu1 }
 0x3dd   :  { %v2189_v34 = vpop.f32.mrb[10].mxu1 }
 0x3de   :  { %v2190_v54 = vpop.f32.mrb[11].mxu1  ;;  %2193 = vst.msk [vmem:[#allocation9] sm:$0x1] %vm2192_vm7, %v2187_v32 }
 0x3df   :  { %2983 = shalt.err (!%p2980_p0)
}
 0x3e0   :  { %s2984_s24 = scalar_lea.hbm %s3172_s7, 16 }
 0x3e1   :  { %p2985_p1 = scmp.ne.s32.totalorder %s3172_s7, %s2984_s24  ;;  %p2988_p2 = scmp.lt.u32.totalorder %s2984_s24, %s3172_s7 }
 0x3e3   :  { %p2990_p3 = pnand %p2988_p2, %p2985_p1 }
 0x3e5   :  { %2993 = shalt.err (!%p2990_p3)
}
 0x3e6   :  { %2203 = dma.vmem_to_hbm [thread:$0]  %s2201_s5, 16, %s3172_s7, [#allocation5]  }
 0x3e7   :  { %2998 = dma.done.wait [#allocation5], 16  }
 0x3e8   :  { %2999 = vsyncadd [#allocation5], 4294967280 }
 0x3e9   :  { %2207 = vsyncpa [#allocation4], 1 }
 0x3ea   :  { %2208 = vsyncpa [#allocation7], 1 }
 0x3eb   :  { %2209 = vsyncpa [#allocation5], 1 }

</bundles_post_ra>
